<compile_context>
chip_gen: v7x
topology: tpu7x:2x2x1
jax: 0.10.0
libtpu: 0.0.40
codegen_flags: <defaults>
</compile_context>

<pallas_src>
import functools

import jax
import jax.numpy as jnp
from jax.experimental import pallas as pl
from jax.experimental.pallas import tpu as pltpu


def _round_up(v, m):
    return (v + m - 1) // m * m


def _prenet_kernel(x_ref, w1_ref, b1_ref, w2_ref, b2_ref, out_ref):
    # Stage 1: Linear(in_dim -> h1) + bias + ReLU  (bf16 x f32 acc)
    h = jnp.dot(x_ref[...], w1_ref[...], preferred_element_type=jnp.float32)
    h = jnp.maximum(h + b1_ref[...], 0.0)          # bias (1, H1) broadcasts over rows
    # Stage 2: Linear(h1 -> h2) + bias + ReLU
    h = h.astype(w2_ref.dtype)                     # back to bf16 for the second MXU pass
    o = jnp.dot(h, w2_ref[...], preferred_element_type=jnp.float32)
    o = jnp.maximum(o + b2_ref[...], 0.0)
    out_ref[...] = o.astype(out_ref.dtype)


@functools.partial(jax.jit, static_argnames=("tm",))
def prenet_forward(x, w1, b1, w2, b2, *, tm=512):
    """Eval-mode Prenet forward.

    x: (B, T, in_dim) float32
    w1: (in_dim, h1), b1: (h1,), w2: (h1, h2), b2: (h2,)
    Returns (B, T, h2) in x.dtype.
    """
    compute_dtype = jnp.bfloat16
    B, T, in_dim = x.shape
    h1 = w1.shape[1]
    h2 = w2.shape[1]
    M = B * T

    # Lane-dense padding of every feature dim (multiples of 128). Zero padding
    # is exact: padded stage-1 columns are ReLU(0)=0 and padded w2 rows are 0,
    # so they contribute nothing; padded output columns are sliced off below.
    K1 = _round_up(in_dim, 128)
    H1 = _round_up(h1, 128)
    H2 = _round_up(h2, 128)

    # Row tiling: TM multiple of 8, clamped for tiny inputs; pad M up to a
    # multiple of TM so every grid step sees a full block.
    TM = min(tm, _round_up(M, 8))
    Mp = _round_up(M, TM)

    x2d = x.reshape(M, in_dim).astype(compute_dtype)
    xp = jnp.zeros((Mp, K1), compute_dtype).at[:M, :in_dim].set(x2d)
    w1p = jnp.zeros((K1, H1), compute_dtype).at[:in_dim, :h1].set(w1.astype(compute_dtype))
    w2p = jnp.zeros((H1, H2), compute_dtype).at[:h1, :h2].set(w2.astype(compute_dtype))
    b1p = jnp.zeros((1, H1), jnp.float32).at[:, :h1].set(b1.astype(jnp.float32)[None, :])
    b2p = jnp.zeros((1, H2), jnp.float32).at[:, :h2].set(b2.astype(jnp.float32)[None, :])

    grid = (Mp // TM,)

    bf16_bytes = 2
    f32_bytes = 4
    out_itemsize = jnp.dtype(x.dtype).itemsize
    cost = pl.CostEstimate(
        flops=2 * Mp * (K1 * H1 + H1 * H2),
        transcendentals=0,
        bytes_accessed=(Mp * K1 * bf16_bytes            # x stream
                        + K1 * H1 * bf16_bytes          # w1
                        + H1 * H2 * bf16_bytes          # w2
                        + (H1 + H2) * f32_bytes         # biases
                        + Mp * H2 * out_itemsize),      # out stream
    )

    out2d = pl.pallas_call(
        _prenet_kernel,
        out_shape=jax.ShapeDtypeStruct((Mp, H2), x.dtype),
        grid_spec=pltpu.PrefetchScalarGridSpec(
            num_scalar_prefetch=0,
            grid=grid,
            in_specs=[
                # x tile streams over the row axis...
                pl.BlockSpec((TM, K1), lambda i: (i, 0)),
                # ...while weights / biases stay resident across all steps.
                pl.BlockSpec((K1, H1), lambda i: (0, 0)),
                pl.BlockSpec((1, H1), lambda i: (0, 0)),
                pl.BlockSpec((H1, H2), lambda i: (0, 0)),
                pl.BlockSpec((1, H2), lambda i: (0, 0)),
            ],
            out_specs=pl.BlockSpec((TM, H2), lambda i: (i, 0)),
        ),
        compiler_params=pltpu.CompilerParams(
            dimension_semantics=("parallel",)),
        cost_estimate=cost,
    )(xp, w1p, b1p, w2p, b2p)

    return out2d[:M, :h2].reshape(B, T, h2)


def _xavier_uniform(key, in_dim, out_dim, gain=1.0, dtype=jnp.float32):
    # torch.nn.init.xavier_uniform_ with gain=calculate_gain('linear')=1.0.
    # Stored as (in_dim, out_dim) so the kernel does x @ W directly
    # (equivalent to torch's x @ weight.T with weight (out, in)).
    limit = gain * float(jnp.sqrt(6.0 / (in_dim + out_dim)))
    return jax.random.uniform(key, (in_dim, out_dim), dtype,
                              minval=-limit, maxval=limit)


if __name__ == "__main__":
    # Small shapes consistent with Prenet(in_dim=32, out_dims=[64, 64])
    B, T, in_dim = 2, 8, 32
    out_dims = [64, 64]

    key = jax.random.PRNGKey(0)
    kx, kw1, kb1, kw2, kb2 = jax.random.split(key, 5)

    x = jax.random.normal(kx, (B, T, in_dim), jnp.float32)

    w1 = _xavier_uniform(kw1, in_dim, out_dims[0])
    b1 = jax.random.uniform(kb1, (out_dims[0],), jnp.float32,
                            minval=-1.0 / float(jnp.sqrt(in_dim)),
                            maxval=1.0 / float(jnp.sqrt(in_dim)))
    w2 = _xavier_uniform(kw2, out_dims[0], out_dims[1])
    b2 = jax.random.uniform(kb2, (out_dims[1],), jnp.float32,
                            minval=-1.0 / float(jnp.sqrt(out_dims[0])),
                            maxval=1.0 / float(jnp.sqrt(out_dims[0])))

    out = prenet_forward(x, w1, b1, w2, b2)
    jax.block_until_ready(out)

    # Reference 1: matches kernel arithmetic (bf16-quantized operands, f32 acc).
    xb = x.reshape(-1, in_dim).astype(jnp.bfloat16).astype(jnp.float32)
    w1b = w1.astype(jnp.bfloat16).astype(jnp.float32)
    w2b = w2.astype(jnp.bfloat16).astype(jnp.float32)
    ref_bf16 = jnp.maximum(xb @ w1b + b1, 0.0)
    ref_bf16 = jnp.maximum(ref_bf16.astype(jnp.bfloat16).astype(jnp.float32) @ w2b + b2, 0.0)
    ref_bf16 = ref_bf16.reshape(B, T, out_dims[-1])
    assert jnp.allclose(out, ref_bf16, atol=1e-3, rtol=1e-3), "mismatch vs bf16-matched reference"

    # Reference 2: full-precision eval-mode Prenet (loose tolerance for bf16 inputs).
    ref_f32 = jnp.maximum(x.reshape(-1, in_dim) @ w1 + b1, 0.0)
    ref_f32 = jnp.maximum(ref_f32 @ w2 + b2, 0.0).reshape(B, T, out_dims[-1])
    assert jnp.allclose(out, ref_f32, atol=1e-1, rtol=1e-1), "mismatch vs f32 reference"

    print("KERNEL_OK")
</pallas_src>

<mosaic_0001>
module attributes {stable_mosaic.version = 11 : i64} {
  func.func @_prenet_kernel(%arg0: i32, %arg1: memref<16x128xbf16, #tpu.memory_space<vmem>>, %arg2: memref<128x128xbf16, #tpu.memory_space<vmem>>, %arg3: memref<1x128xf32, #tpu.memory_space<vmem>>, %arg4: memref<128x128xbf16, #tpu.memory_space<vmem>>, %arg5: memref<1x128xf32, #tpu.memory_space<vmem>>, %arg6: memref<16x128xf32, #tpu.memory_space<vmem>>) attributes {dimension_semantics = [#tpu.dimension_semantics<parallel>], iteration_bounds = array<i64: 1>, scalar_prefetch = 0 : i64, scratch_operands = 0 : i64, tpu.core_type = #tpu.core_type<tc>, window_params = [{transform_indices = @transform_0, window_bounds = array<i64: 16, 128>}, {pipeline_mode = #tpu.pipeline_mode<synchronous>, transform_indices = @transform_1, window_bounds = array<i64: 128, 128>}, {pipeline_mode = #tpu.pipeline_mode<synchronous>, transform_indices = @transform_2, window_bounds = array<i64: 1, 128>}, {pipeline_mode = #tpu.pipeline_mode<synchronous>, transform_indices = @transform_3, window_bounds = array<i64: 128, 128>}, {pipeline_mode = #tpu.pipeline_mode<synchronous>, transform_indices = @transform_4, window_bounds = array<i64: 1, 128>}, {transform_indices = @transform_5, window_bounds = array<i64: 16, 128>}]} {
    %c0 = arith.constant 0 : index
    %c0_0 = arith.constant 0 : index
    %0 = vector.load %arg1[%c0, %c0_0] : memref<16x128xbf16, #tpu.memory_space<vmem>>, vector<16x128xbf16>
    %c0_1 = arith.constant 0 : index
    %c0_2 = arith.constant 0 : index
    %1 = vector.load %arg2[%c0_1, %c0_2] : memref<128x128xbf16, #tpu.memory_space<vmem>>, vector<128x128xbf16>
    %cst = arith.constant dense<0.000000e+00> : vector<16x128xf32>
    %2 = tpu.matmul %0, %1, %cst {dimension_numbers = #tpu.dot_dimension_numbers<[1], [0], [0], [1], [0, 0, 1, 1], [], []>} : vector<16x128xbf16>, vector<128x128xbf16>, vector<16x128xf32> -> vector<16x128xf32>
    %c0_3 = arith.constant 0 : index
    %c0_4 = arith.constant 0 : index
    %3 = vector.load %arg3[%c0_3, %c0_4] : memref<1x128xf32, #tpu.memory_space<vmem>>, vector<1x128xf32>
    %4 = vector.broadcast %3 : vector<1x128xf32> to vector<16x128xf32>
    %5 = arith.addf %2, %4 : vector<16x128xf32>
    %cst_5 = arith.constant 0.000000e+00 : f32
    %6 = vector.broadcast %cst_5 : f32 to vector<16x128xf32>
    %7 = arith.maximumf %5, %6 : vector<16x128xf32>
    %8 = arith.truncf %7 : vector<16x128xf32> to vector<16x128xbf16>
    %c0_6 = arith.constant 0 : index
    %c0_7 = arith.constant 0 : index
    %9 = vector.load %arg4[%c0_6, %c0_7] : memref<128x128xbf16, #tpu.memory_space<vmem>>, vector<128x128xbf16>
    %cst_8 = arith.constant dense<0.000000e+00> : vector<16x128xf32>
    %10 = tpu.matmul %8, %9, %cst_8 {dimension_numbers = #tpu.dot_dimension_numbers<[1], [0], [0], [1], [0, 0, 1, 1], [], []>} : vector<16x128xbf16>, vector<128x128xbf16>, vector<16x128xf32> -> vector<16x128xf32>
    %c0_9 = arith.constant 0 : index
    %c0_10 = arith.constant 0 : index
    %11 = vector.load %arg5[%c0_9, %c0_10] : memref<1x128xf32, #tpu.memory_space<vmem>>, vector<1x128xf32>
    %12 = vector.broadcast %11 : vector<1x128xf32> to vector<16x128xf32>
    %13 = arith.addf %10, %12 : vector<16x128xf32>
    %cst_11 = arith.constant 0.000000e+00 : f32
    %14 = vector.broadcast %cst_11 : f32 to vector<16x128xf32>
    %15 = arith.maximumf %13, %14 : vector<16x128xf32>
    %c0_12 = arith.constant 0 : index
    %c0_13 = arith.constant 0 : index
    %16 = vector.load %arg6[%c0_12, %c0_13] : memref<16x128xf32, #tpu.memory_space<vmem>>, vector<16x128xf32>
    tpu.vector_store %arg6[%c0_12, %c0_13], %15 {strides = array<i32>} : memref<16x128xf32, #tpu.memory_space<vmem>>, vector<16x128xf32>,
    return
  }
  func.func @transform_0(%arg0: i32) -> (i32, i32) {
    %c0_i32 = arith.constant 0 : i32
    %c0_i32_0 = arith.constant 0 : i32
    return %arg0, %c0_i32 : i32, i32
  }
  func.func @transform_1(%arg0: i32) -> (i32, i32) {
    %c0_i32 = arith.constant 0 : i32
    %c0_i32_0 = arith.constant 0 : i32
    %c0_i32_1 = arith.constant 0 : i32
    return %c0_i32, %c0_i32_0 : i32, i32
  }
  func.func @transform_2(%arg0: i32) -> (i32, i32) {
    %c0_i32 = arith.constant 0 : i32
    %c0_i32_0 = arith.constant 0 : i32
    %c0_i32_1 = arith.constant 0 : i32
    return %c0_i32, %c0_i32_0 : i32, i32
  }
  func.func @transform_3(%arg0: i32) -> (i32, i32) {
    %c0_i32 = arith.constant 0 : i32
    %c0_i32_0 = arith.constant 0 : i32
    %c0_i32_1 = arith.constant 0 : i32
    return %c0_i32, %c0_i32_0 : i32, i32
  }
  func.func @transform_4(%arg0: i32) -> (i32, i32) {
    %c0_i32 = arith.constant 0 : i32
    %c0_i32_0 = arith.constant 0 : i32
    %c0_i32_1 = arith.constant 0 : i32
    return %c0_i32, %c0_i32_0 : i32, i32
  }
  func.func @transform_5(%arg0: i32) -> (i32, i32) {
    %c0_i32 = arith.constant 0 : i32
    %c0_i32_0 = arith.constant 0 : i32
    return %arg0, %c0_i32 : i32, i32
  }
}

</mosaic_0001>

<bundles_post_ra>
// kernel: prenet_forward.1
= control target key start
LH: loop header
LB: loop body
LE: loop exit
PB: predicated region body
PF: predicated region fallthrough
CT: control target
= control target key end

     0   :  { %v360_v0 = vmov 0.0   ;;  %vm361_vm0 = vmmov 0   ;;  %s455_s1 = inlined_call_operand.vmem [shape: bf16[128,128], index: 1, kind: input, shape index: {}]   ;;  %s456_s3 = inlined_call_operand.vmem [shape: bf16[128,128], index: 3, kind: input, shape index: {}]   ;;  %s457_s0 = inlined_call_operand.vmem [shape: bf16[16,128], index: 0, kind: input, shape index: {}]   ;;  %s458_s2 = inlined_call_operand.vmem [shape: f32[1,128], index: 2, kind: input, shape index: {}]   ;;  %s459_s4 = inlined_call_operand.vmem [shape: f32[1,128], index: 4, kind: input, shape index: {}]   ;;  %s460_s5 = inlined_call_operand.vmem [shape: f32[16,128], index: 5, kind: output, shape index: {}]  }
   0x1   :  { %301 = vmatprep.subr.bf16.mxu0 %v360_v0  ;;  %v343_v1 = vld [vmem:[%s455_s1] sm:$0xff]   ;;  %317 = vmatprep.mubr.msk.bf16.mxu0 %vm361_vm0, %v360_v0  ;;  %v344_v2 = vld [vmem:[%s455_s1 + $0x8] sm:$0xff]   ;;  %v345_v3 = vld [vmem:[%s455_s1 + $0x10] sm:$0xff]  }
   0x2   :  { %321 = vmatprep.subr.bf16.mxu1 %v360_v0  ;;  %337 = vmatprep.mubr.msk.bf16.mxu1 %vm361_vm0, %v360_v0  ;;  %v352_v4 = vld [vmem:[%s456_s3] sm:$0xff]   ;;  %v346_v5 = vld [vmem:[%s455_s1 + $0x18] sm:$0xff]   ;;  %v353_v6 = vld [vmem:[%s456_s3 + $0x8] sm:$0xff]  }
   0x3   :  { %302 = vmatpush3.bf16.msra.mxu0 %v343_v1  ;;  %322 = vmatpush3.bf16.msra.mxu1 %v352_v4  ;;  %v347_v7 = vld [vmem:[%s455_s1 + $0x20] sm:$0xff]   ;;  %v354_v8 = vld [vmem:[%s456_s3 + $0x10] sm:$0xff]   ;;  %v348_v9 = vld [vmem:[%s455_s1 + $0x28] sm:$0xff]  }
   0x4   :  { %303 = vmatprep.subr.bf16.mxu0 %v360_v0  ;;  %323 = vmatprep.subr.bf16.mxu1 %v360_v0  ;;  %v355_v10 = vld [vmem:[%s456_s3 + $0x18] sm:$0xff]   ;;  %v349_v11 = vld [vmem:[%s455_s1 + $0x30] sm:$0xff]   ;;  %v356_v12 = vld [vmem:[%s456_s3 + $0x20] sm:$0xff]  }
   0x5   :  { %v350_v13 = vld [vmem:[%s455_s1 + $0x38] sm:$0xff]   ;;  %v357_v14 = vld [vmem:[%s456_s3 + $0x28] sm:$0xff]   ;;  %v351_v15 = vld [vmem:[%s457_s0] sm:$0xff]  }
   0x6   :  { %v358_v16 = vld [vmem:[%s456_s3 + $0x30] sm:$0xff]   ;;  %v359_v17 = vld [vmem:[%s456_s3 + $0x38] sm:$0xff]   ;;  %v264_v18 = vld [vmem:[%s458_s2] ss:$0 sm:$0xff] }
   0x7   :  { %304 = vmatpush3.bf16.msra.mxu0 %v344_v2  ;;  %324 = vmatpush3.bf16.msra.mxu1 %v353_v6  ;;  %v274_v28 = vld [vmem:[%s459_s4] ss:$0 sm:$0xff] }
   0x8   :  { %305 = vmatprep.subr.bf16.mxu0 %v360_v0  ;;  %325 = vmatprep.subr.bf16.mxu1 %v360_v0 }
   0xb   :  { %306 = vmatpush3.bf16.msra.mxu0 %v345_v3  ;;  %326 = vmatpush3.bf16.msra.mxu1 %v354_v8 }
   0xc   :  { %307 = vmatprep.subr.bf16.mxu0 %v360_v0  ;;  %327 = vmatprep.subr.bf16.mxu1 %v360_v0 }
   0xf   :  { %308 = vmatpush3.bf16.msra.mxu0 %v346_v5  ;;  %328 = vmatpush3.bf16.msra.mxu1 %v355_v10 }
  0x10   :  { %309 = vmatprep.subr.bf16.mxu0 %v360_v0  ;;  %329 = vmatprep.subr.bf16.mxu1 %v360_v0 }
  0x13   :  { %310 = vmatpush3.bf16.msra.mxu0 %v347_v7  ;;  %330 = vmatpush3.bf16.msra.mxu1 %v356_v12 }
  0x14   :  { %311 = vmatprep.subr.bf16.mxu0 %v360_v0  ;;  %331 = vmatprep.subr.bf16.mxu1 %v360_v0 }
  0x17   :  { %312 = vmatpush3.bf16.msra.mxu0 %v348_v9  ;;  %332 = vmatpush3.bf16.msra.mxu1 %v357_v14 }
  0x18   :  { %313 = vmatprep.subr.bf16.mxu0 %v360_v0  ;;  %333 = vmatprep.subr.bf16.mxu1 %v360_v0 }
  0x1b   :  { %314 = vmatpush3.bf16.msra.mxu0 %v349_v11  ;;  %334 = vmatpush3.bf16.msra.mxu1 %v358_v16 }
  0x1c   :  { %315 = vmatprep.subr.bf16.mxu0 %v360_v0  ;;  %335 = vmatprep.subr.bf16.mxu1 %v360_v0 }
  0x1f   :  { %316 = vmatpush3.bf16.msra.mxu0 %v350_v13  ;;  %336 = vmatpush3.bf16.msra.mxu1 %v359_v17 }
  0x22   :  { %318 = vmatmul.mubr.bf16.vlgmr.msra.gmra.mrb[0].mxu0 %v351_v15 }
  0xf5   :  { %v134_v19 = vpop.f32.mrb[0].mxu0 }
  0xf6   :  { %v135_v20 = vadd.f32 %v264_v18, %v134_v19  ;;  %v319_v21 = vpop.f32.mrb[1].mxu0 }
  0xf7   :  { %v137_v22 = vpop.f32.mrb[2].mxu0 }
  0xf8   :  { %v138_v23 = vadd.f32 %v264_v18, %v137_v22  ;;  %v320_v24 = vpop.f32.mrb[3].mxu0  ;;  %v141_v25 = vmax.f32 %v135_v20, 0.0 }
  0xfa   :  { %v142_v26 = vmax.f32 %v138_v23, 0.0 }
  0xfc   :  { %v143_v27 = vpack.c.bf16 %v142_v26, %v141_v25 }
  0xfe   :  { %338 = vmatmul.mubr.bf16.vlgmr.msra.gmra.mrb[0].mxu1 %v143_v27 }
 0x1d1   :  { %v249_v29 = vpop.f32.mrb[0].mxu1 }
 0x1d2   :  { %v250_v30 = vadd.f32 %v274_v28, %v249_v29  ;;  %v339_v31 = vpop.f32.mrb[1].mxu1 }
 0x1d3   :  { %v252_v32 = vpop.f32.mrb[2].mxu1 }
 0x1d4   :  { %v256_v33 = vmax.f32 %v250_v30, 0.0  ;;  %v253_v34 = vadd.f32 %v274_v28, %v252_v32  ;;  %v340_v35 = vpop.f32.mrb[3].mxu1 }
 0x1d6   :  { %258 = vst [vmem:[%s460_s5] sm:$0xff] %v256_v33  ;;  %v257_v36 = vmax.f32 %v253_v34, 0.0 }
 0x1d8   :  { %259 = vst [vmem:[%s460_s5 + $0x8] sm:$0xff] %v257_v36 }

</bundles_post_ra>
